<compile_context>
chip_gen: v5e
topology: v5e:2x2
jax: 0.10.0
libtpu: 0.0.40
codegen_flags: <defaults>
</compile_context>

<pallas_src>
import jax
import jax.numpy as jnp
from jax.experimental import pallas as pl
from jax.experimental.pallas import tpu as pltpu

LAYERS = [1, 128, 128, 128, 7]
BN_EPS = 1e-5
HEAD_PAD = 128  # lane-dense head width (true head width is LAYERS[-1] = 7)


def _batchnorm(h, inv_n):
    """Training-mode BatchNorm1d (biased var, affine = identity), single-pass stats."""
    s = jnp.sum(h, axis=0, keepdims=True)
    ss = jnp.sum(h * h, axis=0, keepdims=True)
    mean = s * inv_n
    var = ss * inv_n - mean * mean
    return (h - mean) * jax.lax.rsqrt(var + BN_EPS)


def _hidden_layer(h, w_bf16, b, inv_n):
    """linear (bf16 weights, f32 accumulate) -> tanh -> BatchNorm1d."""
    z = jnp.dot(h.astype(jnp.bfloat16), w_bf16,
                preferred_element_type=jnp.float32) + b
    return _batchnorm(jnp.tanh(z), inv_n)


def dnn_kernel(x_ref,
               w0_ref, b0_ref,
               w1_ref, b1_ref,
               w2_ref, b2_ref,
               w3_ref, b3_ref,
               o_ref):
    n = x_ref.shape[0]
    inv_n = 1.0 / n

    x = x_ref[...]                                        # (N, 1) f32

    # Layer 0: K=1 contraction == outer product -> VPU broadcast, no MXU round-trip.
    h = jnp.tanh(x * w0_ref[0:1, :] + b0_ref[...])        # (N, 128)
    h = _batchnorm(h, inv_n)

    # Layers 1, 2: 128x128 bf16 weights on the MXU with f32 accumulation.
    h = _hidden_layer(h, w1_ref[...], b1_ref[...], inv_n)  # (N, 128)
    h = _hidden_layer(h, w2_ref[...], b2_ref[...], inv_n)  # (N, 128)

    # Head: lane-dense (N, 128) tile; real outputs live in columns [0, 7).
    z = jnp.dot(h, w3_ref[...], preferred_element_type=jnp.float32) + b3_ref[...]

    # Softplus, numerically stable: max(z, 0) + log1p(exp(-|z|))
    o_ref[...] = jnp.maximum(z, 0.0) + jnp.log1p(jnp.exp(-jnp.abs(z)))


def init_params(key, layers=LAYERS):
    """Xavier-normal weights (gain=1) and zero biases.

    Weights stored as (in_features, out_features); biases as (1, out_features).
    """
    params = []
    for i in range(len(layers) - 1):
        fan_in, fan_out = layers[i], layers[i + 1]
        key, sub = jax.random.split(key)
        std = (2.0 / (fan_in + fan_out)) ** 0.5
        w = std * jax.random.normal(sub, (fan_in, fan_out), dtype=jnp.float32)
        b = jnp.zeros((1, fan_out), dtype=jnp.float32)
        params.append((w, b))
    return params


def dnn_forward(x, params):
    n = x.shape[0]
    (w0, b0), (w1, b1), (w2, b2), (w3, b3) = params

    # bf16 weights for the two 128x128 layers (halves the dominant weight DMA).
    w1_bf = w1.astype(jnp.bfloat16)
    w2_bf = w2.astype(jnp.bfloat16)

    # Zero-pad the 7-wide head to 128 output columns for unmasked, lane-dense stores.
    out_dim = LAYERS[-1]
    w3_p = jnp.zeros((w3.shape[0], HEAD_PAD), dtype=jnp.float32).at[:, :out_dim].set(w3)
    b3_p = jnp.zeros((1, HEAD_PAD), dtype=jnp.float32).at[:, :out_dim].set(b3)

    flat = [w0, b0, w1_bf, b1, w2_bf, b2, w3_p, b3_p]

    vmem_spec = pl.BlockSpec(memory_space=pltpu.MemorySpace.VMEM)
    out_padded = pl.pallas_call(
        dnn_kernel,
        out_shape=jax.ShapeDtypeStruct((n, HEAD_PAD), jnp.float32),
        in_specs=[vmem_spec] * (1 + len(flat)),
        out_specs=vmem_spec,
    )(x, *flat)

    return out_padded[:, :out_dim]


if __name__ == "__main__":
    key = jax.random.PRNGKey(0)
    pkey, xkey = jax.random.split(key)

    params = init_params(pkey)

    # PINN-style input: (batch, 1) scalar coordinate.
    batch = 32
    x = jax.random.uniform(xkey, (batch, 1), dtype=jnp.float32)

    out = dnn_forward(x, params)
    out = jax.block_until_ready(out)

    assert out.shape == (batch, LAYERS[-1]), out.shape
    assert bool(jnp.all(jnp.isfinite(out)))
    # Softplus output is strictly positive.
    assert bool(jnp.all(out > 0.0))

    print("KERNEL_OK")
</pallas_src>

<mosaic_0001>
module attributes {stable_mosaic.version = 11 : i64} {
  func.func @dnn_kernel(%arg0: memref<32x1xf32, #tpu.memory_space<vmem>>, %arg1: memref<1x128xf32, #tpu.memory_space<vmem>>, %arg2: memref<1x128xf32, #tpu.memory_space<vmem>>, %arg3: memref<128x128xbf16, #tpu.memory_space<vmem>>, %arg4: memref<1x128xf32, #tpu.memory_space<vmem>>, %arg5: memref<128x128xbf16, #tpu.memory_space<vmem>>, %arg6: memref<1x128xf32, #tpu.memory_space<vmem>>, %arg7: memref<128x128xf32, #tpu.memory_space<vmem>>, %arg8: memref<1x128xf32, #tpu.memory_space<vmem>>, %arg9: memref<32x128xf32, #tpu.memory_space<vmem>>) attributes {dimension_semantics = [], scalar_prefetch = 0 : i64, scratch_operands = 0 : i64, tpu.core_type = #tpu.core_type<tc>} {
    %c0 = arith.constant 0 : index
    %c0_0 = arith.constant 0 : index
    %0 = vector.load %arg0[%c0, %c0_0] : memref<32x1xf32, #tpu.memory_space<vmem>>, vector<32x1xf32>
    %c0_1 = arith.constant 0 : index
    %c0_2 = arith.constant 0 : index
    %1 = vector.load %arg1[%c0_1, %c0_2] : memref<1x128xf32, #tpu.memory_space<vmem>>, vector<1x128xf32>
    %2 = vector.broadcast %0 : vector<32x1xf32> to vector<32x128xf32>
    %3 = vector.broadcast %1 : vector<1x128xf32> to vector<32x128xf32>
    %4 = arith.mulf %2, %3 : vector<32x128xf32>
    %c0_3 = arith.constant 0 : index
    %c0_4 = arith.constant 0 : index
    %5 = vector.load %arg2[%c0_3, %c0_4] : memref<1x128xf32, #tpu.memory_space<vmem>>, vector<1x128xf32>
    %6 = vector.broadcast %5 : vector<1x128xf32> to vector<32x128xf32>
    %7 = arith.addf %4, %6 : vector<32x128xf32>
    %8 = math.tanh %7 : vector<32x128xf32>
    %cst = arith.constant dense<0.000000e+00> : vector<128xf32>
    %9 = vector.multi_reduction <add>, %8, %cst [0] : vector<32x128xf32> to vector<128xf32>
    %10 = vector.shape_cast %9 : vector<128xf32> to vector<1x128xf32>
    %11 = arith.mulf %8, %8 : vector<32x128xf32>
    %cst_5 = arith.constant dense<0.000000e+00> : vector<128xf32>
    %12 = vector.multi_reduction <add>, %11, %cst_5 [0] : vector<32x128xf32> to vector<128xf32>
    %13 = vector.shape_cast %12 : vector<128xf32> to vector<1x128xf32>
    %cst_6 = arith.constant 3.125000e-02 : f32
    %14 = vector.broadcast %cst_6 : f32 to vector<1x128xf32>
    %15 = arith.mulf %10, %14 : vector<1x128xf32>
    %cst_7 = arith.constant 3.125000e-02 : f32
    %16 = vector.broadcast %cst_7 : f32 to vector<1x128xf32>
    %17 = arith.mulf %13, %16 : vector<1x128xf32>
    %18 = arith.mulf %15, %15 : vector<1x128xf32>
    %19 = arith.subf %17, %18 : vector<1x128xf32>
    %20 = vector.broadcast %15 : vector<1x128xf32> to vector<32x128xf32>
    %21 = arith.subf %8, %20 : vector<32x128xf32>
    %cst_8 = arith.constant 9.99999974E-6 : f32
    %22 = vector.broadcast %cst_8 : f32 to vector<1x128xf32>
    %23 = arith.addf %19, %22 : vector<1x128xf32>
    %24 = math.rsqrt %23 : vector<1x128xf32>
    %25 = vector.broadcast %24 : vector<1x128xf32> to vector<32x128xf32>
    %26 = arith.mulf %21, %25 : vector<32x128xf32>
    %c0_9 = arith.constant 0 : index
    %c0_10 = arith.constant 0 : index
    %27 = vector.load %arg3[%c0_9, %c0_10] : memref<128x128xbf16, #tpu.memory_space<vmem>>, vector<128x128xbf16>
    %c0_11 = arith.constant 0 : index
    %c0_12 = arith.constant 0 : index
    %28 = vector.load %arg4[%c0_11, %c0_12] : memref<1x128xf32, #tpu.memory_space<vmem>>, vector<1x128xf32>
    %29 = arith.truncf %26 : vector<32x128xf32> to vector<32x128xbf16>
    %cst_13 = arith.constant dense<0.000000e+00> : vector<32x128xf32>
    %30 = tpu.matmul %29, %27, %cst_13 {dimension_numbers = #tpu.dot_dimension_numbers<[1], [0], [0], [1], [0, 0, 1, 1], [], []>} : vector<32x128xbf16>, vector<128x128xbf16>, vector<32x128xf32> -> vector<32x128xf32>
    %31 = vector.broadcast %28 : vector<1x128xf32> to vector<32x128xf32>
    %32 = arith.addf %30, %31 : vector<32x128xf32>
    %33 = math.tanh %32 : vector<32x128xf32>
    %cst_14 = arith.constant dense<0.000000e+00> : vector<128xf32>
    %34 = vector.multi_reduction <add>, %33, %cst_14 [0] : vector<32x128xf32> to vector<128xf32>
    %35 = vector.shape_cast %34 : vector<128xf32> to vector<1x128xf32>
    %36 = arith.mulf %33, %33 : vector<32x128xf32>
    %cst_15 = arith.constant dense<0.000000e+00> : vector<128xf32>
    %37 = vector.multi_reduction <add>, %36, %cst_15 [0] : vector<32x128xf32> to vector<128xf32>
    %38 = vector.shape_cast %37 : vector<128xf32> to vector<1x128xf32>
    %cst_16 = arith.constant 3.125000e-02 : f32
    %39 = vector.broadcast %cst_16 : f32 to vector<1x128xf32>
    %40 = arith.mulf %35, %39 : vector<1x128xf32>
    %cst_17 = arith.constant 3.125000e-02 : f32
    %41 = vector.broadcast %cst_17 : f32 to vector<1x128xf32>
    %42 = arith.mulf %38, %41 : vector<1x128xf32>
    %43 = arith.mulf %40, %40 : vector<1x128xf32>
    %44 = arith.subf %42, %43 : vector<1x128xf32>
    %45 = vector.broadcast %40 : vector<1x128xf32> to vector<32x128xf32>
    %46 = arith.subf %33, %45 : vector<32x128xf32>
    %cst_18 = arith.constant 9.99999974E-6 : f32
    %47 = vector.broadcast %cst_18 : f32 to vector<1x128xf32>
    %48 = arith.addf %44, %47 : vector<1x128xf32>
    %49 = math.rsqrt %48 : vector<1x128xf32>
    %50 = vector.broadcast %49 : vector<1x128xf32> to vector<32x128xf32>
    %51 = arith.mulf %46, %50 : vector<32x128xf32>
    %c0_19 = arith.constant 0 : index
    %c0_20 = arith.constant 0 : index
    %52 = vector.load %arg5[%c0_19, %c0_20] : memref<128x128xbf16, #tpu.memory_space<vmem>>, vector<128x128xbf16>
    %c0_21 = arith.constant 0 : index
    %c0_22 = arith.constant 0 : index
    %53 = vector.load %arg6[%c0_21, %c0_22] : memref<1x128xf32, #tpu.memory_space<vmem>>, vector<1x128xf32>
    %54 = arith.truncf %51 : vector<32x128xf32> to vector<32x128xbf16>
    %cst_23 = arith.constant dense<0.000000e+00> : vector<32x128xf32>
    %55 = tpu.matmul %54, %52, %cst_23 {dimension_numbers = #tpu.dot_dimension_numbers<[1], [0], [0], [1], [0, 0, 1, 1], [], []>} : vector<32x128xbf16>, vector<128x128xbf16>, vector<32x128xf32> -> vector<32x128xf32>
    %56 = vector.broadcast %53 : vector<1x128xf32> to vector<32x128xf32>
    %57 = arith.addf %55, %56 : vector<32x128xf32>
    %58 = math.tanh %57 : vector<32x128xf32>
    %cst_24 = arith.constant dense<0.000000e+00> : vector<128xf32>
    %59 = vector.multi_reduction <add>, %58, %cst_24 [0] : vector<32x128xf32> to vector<128xf32>
    %60 = vector.shape_cast %59 : vector<128xf32> to vector<1x128xf32>
    %61 = arith.mulf %58, %58 : vector<32x128xf32>
    %cst_25 = arith.constant dense<0.000000e+00> : vector<128xf32>
    %62 = vector.multi_reduction <add>, %61, %cst_25 [0] : vector<32x128xf32> to vector<128xf32>
    %63 = vector.shape_cast %62 : vector<128xf32> to vector<1x128xf32>
    %cst_26 = arith.constant 3.125000e-02 : f32
    %64 = vector.broadcast %cst_26 : f32 to vector<1x128xf32>
    %65 = arith.mulf %60, %64 : vector<1x128xf32>
    %cst_27 = arith.constant 3.125000e-02 : f32
    %66 = vector.broadcast %cst_27 : f32 to vector<1x128xf32>
    %67 = arith.mulf %63, %66 : vector<1x128xf32>
    %68 = arith.mulf %65, %65 : vector<1x128xf32>
    %69 = arith.subf %67, %68 : vector<1x128xf32>
    %70 = vector.broadcast %65 : vector<1x128xf32> to vector<32x128xf32>
    %71 = arith.subf %58, %70 : vector<32x128xf32>
    %cst_28 = arith.constant 9.99999974E-6 : f32
    %72 = vector.broadcast %cst_28 : f32 to vector<1x128xf32>
    %73 = arith.addf %69, %72 : vector<1x128xf32>
    %74 = math.rsqrt %73 : vector<1x128xf32>
    %75 = vector.broadcast %74 : vector<1x128xf32> to vector<32x128xf32>
    %76 = arith.mulf %71, %75 : vector<32x128xf32>
    %c0_29 = arith.constant 0 : index
    %c0_30 = arith.constant 0 : index
    %77 = vector.load %arg7[%c0_29, %c0_30] : memref<128x128xf32, #tpu.memory_space<vmem>>, vector<128x128xf32>
    %cst_31 = arith.constant dense<0.000000e+00> : vector<32x128xf32>
    %78 = tpu.matmul %76, %77, %cst_31 {dimension_numbers = #tpu.dot_dimension_numbers<[1], [0], [0], [1], [0, 0, 1, 1], [], []>} : vector<32x128xf32>, vector<128x128xf32>, vector<32x128xf32> -> vector<32x128xf32>
    %c0_32 = arith.constant 0 : index
    %c0_33 = arith.constant 0 : index
    %79 = vector.load %arg8[%c0_32, %c0_33] : memref<1x128xf32, #tpu.memory_space<vmem>>, vector<1x128xf32>
    %80 = vector.broadcast %79 : vector<1x128xf32> to vector<32x128xf32>
    %81 = arith.addf %78, %80 : vector<32x128xf32>
    %cst_34 = arith.constant 0.000000e+00 : f32
    %82 = vector.broadcast %cst_34 : f32 to vector<32x128xf32>
    %83 = arith.maximumf %81, %82 : vector<32x128xf32>
    %84 = math.absf %81 : vector<32x128xf32>
    %cst_35 = arith.constant 0.000000e+00 : f32
    %85 = vector.broadcast %cst_35 : f32 to vector<32x128xf32>
    %86 = arith.subf %85, %84 : vector<32x128xf32>
    %87 = math.exp %86 : vector<32x128xf32>
    %88 = math.log1p %87 : vector<32x128xf32>
    %89 = arith.addf %83, %88 : vector<32x128xf32>
    %c0_36 = arith.constant 0 : index
    %c0_37 = arith.constant 0 : index
    %90 = vector.load %arg9[%c0_36, %c0_37] : memref<32x128xf32, #tpu.memory_space<vmem>>, vector<32x128xf32>
    tpu.vector_store %arg9[%c0_36, %c0_37], %89 {strides = array<i32>} : memref<32x128xf32, #tpu.memory_space<vmem>>, vector<32x128xf32>,
    return
  }
}

</mosaic_0001>

<bundles_post_ra>
// kernel: tpu_custom_call.1
= control target key start
LH: loop header
LB: loop body
LE: loop exit
PB: predicated region body
PF: predicated region fallthrough
CT: control target
= control target key end

     0   :  { %14 = vsyncpa [#allocation3], 0  ;;  %s934_s0 = inlined_call_operand.vmem [shape: f32[32,1], index: 0, kind: input, shape index: {}]   ;;  %s935_s1 = inlined_call_operand.vmem [shape: f32[1,128], index: 1, kind: input, shape index: {}]   ;;  %s936_s2 = inlined_call_operand.vmem [shape: f32[1,128], index: 2, kind: input, shape index: {}]   ;;  %s937_s3 = inlined_call_operand.hbm [shape: bf16[128,128], index: 3, kind: input, shape index: {}]   ;;  %s938_s4 = inlined_call_operand.vmem [shape: f32[1,128], index: 4, kind: input, shape index: {}]   ;;  %s939_s5 = inlined_call_operand.hbm [shape: bf16[128,128], index: 5, kind: input, shape index: {}]   ;;  %s940_s6 = inlined_call_operand.vmem [shape: f32[1,128], index: 6, kind: input, shape index: {}]   ;;  %s941_s7 = inlined_call_operand.hbm [shape: f32[128,128], index: 7, kind: input, shape index: {}]   ;;  %s942_s8 = inlined_call_operand.vmem [shape: f32[1,128], index: 8, kind: input, shape index: {}]   ;;  %s943_s9 = inlined_call_operand.hbm [shape: f32[32,128], index: 9, kind: output, shape index: {}]  }
   0x1   :  { %15 = vsyncpa [#allocation6], 0 }
   0x2   :  { %16 = vsyncpa [#allocation4], 0  ;;  %s42_s11 = sshll.u32 %s939_s5, 4  ;;  %s830_s12 = smov [#allocation5]   ;;  %s43_s11 = int_to_ptr.hbm [resolvable:$true] %s42_s11 }
   0x3   :  { %s44_s13 = sshll.u32 %s830_s12, 4  ;;  %s27_s16 = sshll.u32 %s937_s3, 4  ;;  %s45_s13 = int_to_ptr.vmem [resolvable:$true] %s44_s13  ;;  %s28_s16 = int_to_ptr.hbm [resolvable:$true] %s27_s16 }
   0x4   :  { %s831_s17 = smov 64   ;;  %s832_s18 = smov 4  }
   0x5   :  { %50 = dma.hbm_to_vmem [thread:$0]  %s43_s11, 1024, %s45_s13, [#allocation6], %s831_s17, %s831_s17, %s832_s18  }
   0x6   :  { %s833_s19 = smov [#allocation2]   ;;  %s57_s23 = sshll.u32 %s941_s7, 4  ;;  %s58_s23 = int_to_ptr.hbm [resolvable:$true] %s57_s23 }
   0x7   :  { %s29_s20 = sshll.u32 %s833_s19, 4  ;;  %s834_s5 = smov [#allocation7]   ;;  %s30_s20 = int_to_ptr.vmem [resolvable:$true] %s29_s20 }
   0x8   :  { %35 = dma.hbm_to_vmem [thread:$0]  %s28_s16, 1024, %s30_s20, [#allocation3], %s831_s17, %s831_s17, %s832_s18  }
   0x9   :  { %s59_s24 = sshll.u32 %s834_s5, 4  ;;  %s835_s25 = smov 128   ;;  %s60_s24 = int_to_ptr.vmem [resolvable:$true] %s59_s24 }
   0xa   :  { %s836_s26 = smov 8  }
   0xb   :  { %65 = dma.hbm_to_vmem [thread:$0]  %s58_s23, 2048, %s60_s24, [#allocation6], %s835_s25, %s835_s25, %s836_s26  }
   0xc   :  { %824 = dma.done.wait [#allocation3], 1024  }
   0xd   :  { %825 = vsyncadd [#allocation3], 4294966272 }
   0xe   :  { %826 = dma.done.wait [#allocation6], 3072  }
   0xf   :  { %827 = vsyncadd [#allocation6], 4294964224  ;;  %v837_v0 = vmov 0   ;;  %v82_v1 = vld [vmem:[%s934_s0 + $0x10] sm:$0xff]  ;;  %v80_v2 = vld [vmem:[%s934_s0] sm:$0xff]  ;;  %s564_s20 = sshll.u32 %s943_s9, 4  ;;  %s565_s20 = int_to_ptr.hbm [resolvable:$true] %s564_s20 }
  0x10   :  { %676 = vset.pattern.permute.xlu1 %v837_v0  ;;  %675 = vset.pattern.permute.xlu0 %v837_v0  ;;  %v83_v3 = vld [vmem:[%s934_s0 + $0x18] sm:$0xff]  ;;  %v81_v4 = vld [vmem:[%s934_s0 + $0x8] sm:$0xff]  ;;  %v648_v6 = vld [vmem:[#allocation2 + $0x30] sm:$0xff] }
  0x11   :  { %97 = vperm.xlu1 %676, %v82_v1   ;;  %87 = vperm.xlu0 %675, %v80_v2   ;;  %v649_v5 = vld [vmem:[#allocation2 + $0x38] sm:$0xff]  ;;  %v647_v7 = vld [vmem:[#allocation2 + $0x28] sm:$0xff]  ;;  %v677_v8 = vld [vmem:[%s935_s1] ss:$0 sm:$0xff] }
  0x12   :  { %239 = vmatpush.bf16.msra.mxu0 %v649_v5  ;;  %658 = vmatpush.bf16.msra.mxu3 %v649_v5  ;;  %v646_v11 = vld [vmem:[#allocation2 + $0x20] sm:$0xff]  ;;  %v645_v15 = vld [vmem:[#allocation2 + $0x18] sm:$0xff]  ;;  %v644_v23 = vld [vmem:[#allocation2 + $0x10] sm:$0xff] }
  0x13   :  { %v678_v12 = vld [vmem:[%s936_s2] ss:$0 sm:$0xff]  ;;  %v643_v25 = vld [vmem:[#allocation2 + $0x8] sm:$0xff] }
  0x14   :  { %v642_v28 = vld [vmem:[#allocation2] sm:$0xff] }
  0x16   :  { %240 = vmatpush.bf16.msra.mxu0 %v648_v6  ;;  %659 = vmatpush.bf16.msra.mxu3 %v648_v6 }
  0x19   :  { %102 = vperm.xlu1 %676, %v83_v3   ;;  %92 = vperm.xlu0 %675, %v81_v4  }
  0x1a   :  { %241 = vmatpush.bf16.msra.mxu0 %v647_v7  ;;  %660 = vmatpush.bf16.msra.mxu3 %v647_v7 }
  0x1e   :  { %242 = vmatpush.bf16.msra.mxu0 %v646_v11  ;;  %661 = vmatpush.bf16.msra.mxu3 %v646_v11  ;;  %v657_v11 = vld [vmem:[#allocation5 + $0x38] sm:$0xff] }
  0x1f   :  { %377 = vmatpush.bf16.msra.mxu1 %v657_v11 }
  0x22   :  { %243 = vmatpush.bf16.msra.mxu0 %v645_v15  ;;  %662 = vmatpush.bf16.msra.mxu3 %v645_v15  ;;  %v655_v15 = vld [vmem:[#allocation5 + $0x28] sm:$0xff] }
  0x26   :  { %244 = vmatpush.bf16.msra.mxu0 %v644_v23  ;;  %663 = vmatpush.bf16.msra.mxu3 %v644_v23 }
  0x2a   :  { %245 = vmatpush.bf16.msra.mxu0 %v643_v25  ;;  %664 = vmatpush.bf16.msra.mxu3 %v643_v25 }
  0x2e   :  { %246 = vmatpush.bf16.msra.mxu0 %v642_v28  ;;  %665 = vmatpush.bf16.msra.mxu3 %v642_v28 }
  0x83   :  { %v98_v9 = vpop.permute.xlu1 %97  ;;  %v88_v10 = vpop.permute.xlu0 %87 }
  0x84   :  { %v108_v13 = vmul.f32 %v677_v8, %v88_v10  ;;  %v110_v14 = vmul.f32 %v677_v8, %v98_v9 }
  0x86   :  { %v116_v16 = vadd.f32 %v678_v12, %v108_v13  ;;  %v118_v19 = vadd.f32 %v678_v12, %v110_v14  ;;  %v656_v13 = vld [vmem:[#allocation5 + $0x30] sm:$0xff]  ;;  %v679_v14 = vld [vmem:[%s938_s4] ss:$0 sm:$0xff] }
  0x87   :  { %378 = vmatpush.bf16.msra.mxu1 %v656_v13  ;;  %v460_v13 = vld [vmem:[#allocation7 + $0x78] sm:$0xff] }
  0x88   :  { %682 = vtanh.f32 %v116_v16  ;;  %465 = vmatpush.msra.mxu2 %v460_v13 }
  0x89   :  { %684 = vtanh.f32 %v118_v19  ;;  %v654_v19 = vld [vmem:[#allocation5 + $0x20] sm:$0xff] }
  0x8b   :  { %v103_v17 = vpop.permute.xlu1 %102  ;;  %v93_v18 = vpop.permute.xlu0 %92  ;;  %379 = vmatpush.bf16.msra.mxu1 %v655_v15 }
  0x8c   :  { %v111_v20 = vmul.f32 %v677_v8, %v103_v17  ;;  %v109_v21 = vmul.f32 %v677_v8, %v93_v18 }
  0x8e   :  { %v117_v22 = vadd.f32 %v678_v12, %v109_v21  ;;  %v119_v24 = vadd.f32 %v678_v12, %v111_v20  ;;  %v683_v26 = vpop.eup %682 }
  0x8f   :  { %v685_v27 = vpop.eup %684  ;;  %v133_v30 = vmul.f32 %v683_v26, %v683_v26  ;;  %380 = vmatpush.bf16.msra.mxu1 %v654_v19  ;;  %v456_v19 = vld [vmem:[#allocation7 + $0x58] sm:$0xff] }
  0x90   :  { %686 = vtanh.f32 %v117_v22  ;;  %v135_v34 = vmul.f32 %v685_v27, %v685_v27  ;;  %v653_v22 = vld [vmem:[#allocation5 + $0x18] sm:$0xff] }
  0x91   :  { %688 = vtanh.f32 %v119_v24 }
  0x93   :  { %381 = vmatpush.bf16.msra.mxu1 %v653_v22 }
  0x96   :  { %v687_v29 = vpop.eup %686 }
  0x97   :  { %v124_v31 = vadd.f32 %v687_v29, %v683_v26  ;;  %v134_v32 = vmul.f32 %v687_v29, %v687_v29  ;;  %v689_v33 = vpop.eup %688 }
  0x98   :  { %v136_v37 = vmul.f32 %v689_v33, %v689_v33 }
  0x99   :  { %v125_v35 = vadd.f32 %v685_v27, %v124_v31  ;;  %v137_v36 = vadd.f32 %v134_v32, %v133_v30 }
  0x9b   :  { %v126_v38 = vadd.f32 %v689_v33, %v125_v35  ;;  %v138_v39 = vadd.f32 %v137_v36, %v135_v34 }
  0x9d   :  { %v127_v40 = vrot.slane %v126_v38, 4  ;;  %v139_v41 = vadd.f32 %v138_v39, %v136_v37 }
  0x9f   :  { %v128_v42 = vadd.f32 %v127_v40, %v126_v38  ;;  %v140_v43 = vrot.slane %v139_v41, 4  ;;  %v650_v40 = vld [vmem:[#allocation5] sm:$0xff] }
  0xa1   :  { %v129_v44 = vrot.slane %v128_v42, 2  ;;  %v141_v45 = vadd.f32 %v140_v43, %v139_v41 }
  0xa3   :  { %v130_v46 = vadd.f32 %v129_v44, %v128_v42  ;;  %v142_v47 = vrot.slane %v141_v45, 2 }
  0xa5   :  { %v131_v48 = vrot.slane %v130_v46, 1  ;;  %v143_v49 = vadd.f32 %v142_v47, %v141_v45 }
  0xa7   :  { %v132_v50 = vadd.f32 %v131_v48, %v130_v46  ;;  %v144_v51 = vrot.slane %v143_v49, 1 }
  0xa9   :  { %v145_v52 = vadd.f32 %v144_v51, %v143_v49  ;;  %v146_v53 = vmul.f32 0.03125, %v132_v50 }
  0xab   :  { %v147_v54 = vmul.f32 0.03125, %v145_v52  ;;  %v148_v55 = vmul.f32 %v146_v53, %v146_v53  ;;  %v150_v0 = vsub.f32 %v683_v26, %v146_v53  ;;  %v151_v1 = vsub.f32 %v687_v29, %v146_v53  ;;  %v652_v26 = vld [vmem:[#allocation5 + $0x10] sm:$0xff] }
  0xac   :  { %v152_v2 = vsub.f32 %v685_v27, %v146_v53  ;;  %v153_v3 = vsub.f32 %v689_v33, %v146_v53  ;;  %382 = vmatpush.bf16.msra.mxu1 %v652_v26  ;;  %v651_v33 = vld [vmem:[#allocation5 + $0x8] sm:$0xff]  ;;  %v453_v26 = vld [vmem:[#allocation7 + $0x40] sm:$0xff] }
  0xad   :  { %v149_v56 = vsub.f32 %v147_v54, %v148_v55 }
  0xaf   :  { %v154_v57 = vadd.f32 1e-05, %v149_v56 }
  0xb0   :  { %383 = vmatpush.bf16.msra.mxu1 %v651_v33 }
  0xb1   :  { %690 = vrsqrt.f32 %v154_v57  ;;  %vm161_vm1 = vweird.f32 %v154_v57 }
  0xb4   :  { %384 = vmatpush.bf16.msra.mxu1 %v650_v40 }
  0xb7   :  { %v691_v58 = vpop.eup %690 }
  0xb8   :  { %v156_v59 = vmul.f32 %v691_v58, %v154_v57  ;;  %vm162_vm0 = vweird.f32 %v691_v58 }
  0xb9   :  { %vm163_vm2 = vmor %vm161_vm1, %vm162_vm0 }
  0xba   :  { %v157_v60 = vmul.f32 %v691_v58, %v156_v59 }
  0xbc   :  { %v158_v61 = vmul.f32 0.5, %v157_v60 }
  0xbe   :  { %v159_v62 = vsub.f32 1.5, %v158_v61 }
  0xc0   :  { %v160_v63 = vmul.f32 %v691_v58, %v159_v62 }
  0xc2   :  { %v164_v4 = vsel %vm163_vm2, %v691_v58, %v160_v63 }
  0xc3   :  { %v165_v5 = vmul.f32 %v164_v4, %v150_v0  ;;  %v166_v6 = vmul.f32 %v164_v4, %v151_v1  ;;  %v167_v7 = vmul.f32 %v164_v4, %v152_v2  ;;  %v168_v8 = vmul.f32 %v164_v4, %v153_v3 }
  0xc5   :  { %v186_v9 = vpack.c.bf16 %v166_v6, %v165_v5  ;;  %v187_v10 = vpack.c.bf16 %v168_v8, %v167_v7 }
  0xc7   :  { %247 = vmatmul.bf16.vlgmr.msra.gmra.mxu0 %v186_v9  ;;  %252 = vmatmul.bf16.vlgmr.msra.gmra.mxu3 %v187_v10 }
 0x144   :  { %v248_v12 = vpop.f32.mrf.mxu0 }
 0x145   :  { %v249_v16 = vadd.f32 %v679_v14, %v248_v12 }
 0x147   :  { %692 = vtanh.f32 %v249_v16  ;;  %v458_v16 = vld [vmem:[#allocation7 + $0x68] sm:$0xff] }
 0x14a   :  { %v253_v17 = vpop.f32.mrf.mxu3 }
 0x14b   :  { %v254_v20 = vadd.f32 %v679_v14, %v253_v17  ;;  %v457_v17 = vld [vmem:[#allocation7 + $0x60] sm:$0xff] }
 0x14c   :  { %v250_v18 = vpop.f32.mrf.mxu0 }
 0x14d   :  { %v251_v21 = vadd.f32 %v679_v14, %v250_v18  ;;  %v693_v24 = vpop.eup %692  ;;  %v680_v18 = vld [vmem:[%s940_s6] ss:$0 sm:$0xff] }
 0x14e   :  { %v271_v28 = vmul.f32 %v693_v24, %v693_v24 }
 0x14f   :  { %694 = vtanh.f32 %v251_v21 }
 0x150   :  { %696 = vtanh.f32 %v254_v20  ;;  %v455_v20 = vld [vmem:[#allocation7 + $0x50] sm:$0xff] }
 0x152   :  { %v255_v23 = vpop.f32.mrf.mxu3 }
 0x153   :  { %v256_v25 = vadd.f32 %v679_v14, %v255_v23  ;;  %v459_v14 = vld [vmem:[#allocation7 + $0x70] sm:$0xff] }
 0x154   :  { %466 = vmatpush.msra.mxu2 %v459_v14 }
 0x155   :  { %v695_v27 = vpop.eup %694  ;;  %698 = vtanh.f32 %v256_v25 }
 0x156   :  { %v262_v29 = vadd.f32 %v695_v27, %v693_v24  ;;  %v272_v30 = vmul.f32 %v695_v27, %v695_v27  ;;  %v697_v31 = vpop.eup %696  ;;  %467 = vmatpush.msra.mxu2 %v458_v16 }
 0x157   :  { %v273_v34 = vmul.f32 %v697_v31, %v697_v31 }
 0x158   :  { %v275_v32 = vadd.f32 %v272_v30, %v271_v28  ;;  %v263_v35 = vadd.f32 %v697_v31, %v262_v29  ;;  %468 = vmatpush.msra.mxu2 %v457_v17  ;;  %v451_v28 = vld [vmem:[#allocation7 + $0x30] sm:$0xff]  ;;  %v450_v30 = vld [vmem:[#allocation7 + $0x28] sm:$0xff] }
 0x15a   :  { %v276_v39 = vadd.f32 %v275_v32, %v273_v34  ;;  %469 = vmatpush.msra.mxu2 %v456_v19  ;;  %v449_v34 = vld [vmem:[#allocation7 + $0x20] sm:$0xff] }
 0x15b   :  { %v699_v36 = vpop.eup %698  ;;  %v681_v19 = vld [vmem:[%s942_s8] ss:$0 sm:$0xff]  ;;  %s838_s8 = smov [#allocation8]  }
 0x15c   :  { %v264_v37 = vadd.f32 %v699_v36, %v263_v35  ;;  %v274_v38 = vmul.f32 %v699_v36, %v699_v36  ;;  %470 = vmatpush.msra.mxu2 %v455_v20  ;;  %s562_s17 = sshll.u32 %s838_s8, 4  ;;  %s563_s17 = int_to_ptr.vmem [resolvable:$true] %s562_s17 }
 0x15e   :  { %v265_v41 = vrot.slane %v264_v37, 4  ;;  %v277_v42 = vadd.f32 %v276_v39, %v274_v38 }
 0x160   :  { %v266_v43 = vadd.f32 %v265_v41, %v264_v37  ;;  %v278_v44 = vrot.slane %v277_v42, 4  ;;  %v448_v37 = vld [vmem:[#allocation7 + $0x18] sm:$0xff]  ;;  %v447_v41 = vld [vmem:[#allocation7 + $0x10] sm:$0xff] }
 0x162   :  { %v267_v45 = vrot.slane %v266_v43, 2  ;;  %v279_v46 = vadd.f32 %v278_v44, %v277_v42  ;;  %v446_v44 = vld [vmem:[#allocation7 + $0x8] sm:$0xff] }
 0x164   :  { %v268_v47 = vadd.f32 %v267_v45, %v266_v43  ;;  %v280_v48 = vrot.slane %v279_v46, 2 }
 0x166   :  { %v269_v49 = vrot.slane %v268_v47, 1  ;;  %v281_v50 = vadd.f32 %v280_v48, %v279_v46 }
 0x168   :  { %v270_v51 = vadd.f32 %v269_v49, %v268_v47  ;;  %v282_v52 = vrot.slane %v281_v50, 1  ;;  %v445_v49 = vld [vmem:[#allocation7] sm:$0xff] }
 0x16a   :  { %v283_v53 = vadd.f32 %v282_v52, %v281_v50  ;;  %v284_v54 = vmul.f32 0.03125, %v270_v51 }
 0x16c   :  { %v285_v55 = vmul.f32 0.03125, %v283_v53  ;;  %v286_v56 = vmul.f32 %v284_v54, %v284_v54  ;;  %v288_v1 = vsub.f32 %v693_v24, %v284_v54  ;;  %v289_v2 = vsub.f32 %v695_v27, %v284_v54  ;;  %v454_v24 = vld [vmem:[#allocation7 + $0x48] sm:$0xff]  ;;  %v452_v27 = vld [vmem:[#allocation7 + $0x38] sm:$0xff] }
 0x16d   :  { %v290_v7 = vsub.f32 %v697_v31, %v284_v54  ;;  %v291_v8 = vsub.f32 %v699_v36, %v284_v54  ;;  %471 = vmatpush.msra.mxu2 %v454_v24 }
 0x16e   :  { %v287_v57 = vsub.f32 %v285_v55, %v286_v56 }
 0x16f   :  { %472 = vmatpush.msra.mxu2 %v453_v26 }
 0x170   :  { %v292_v58 = vadd.f32 1e-05, %v287_v57 }
 0x171   :  { %473 = vmatpush.msra.mxu2 %v452_v27 }
 0x172   :  { %700 = vrsqrt.f32 %v292_v58  ;;  %vm299_vm4 = vweird.f32 %v292_v58 }
 0x173   :  { %474 = vmatpush.msra.mxu2 %v451_v28 }
 0x175   :  { %475 = vmatpush.msra.mxu2 %v450_v30 }
 0x177   :  { %476 = vmatpush.msra.mxu2 %v449_v34 }
 0x178   :  { %v701_v59 = vpop.eup %700 }
 0x179   :  { %v294_v60 = vmul.f32 %v701_v59, %v292_v58  ;;  %vm300_vm3 = vweird.f32 %v701_v59  ;;  %477 = vmatpush.msra.mxu2 %v448_v37 }
 0x17a   :  { %vm301_vm5 = vmor %vm299_vm4, %vm300_vm3 }
 0x17b   :  { %v295_v61 = vmul.f32 %v701_v59, %v294_v60  ;;  %478 = vmatpush.msra.mxu2 %v447_v41 }
 0x17d   :  { %v296_v62 = vmul.f32 0.5, %v295_v61  ;;  %479 = vmatpush.msra.mxu2 %v446_v44 }
 0x17f   :  { %v297_v63 = vsub.f32 1.5, %v296_v62  ;;  %480 = vmatpush.msra.mxu2 %v445_v49 }
 0x181   :  { %v298_v0 = vmul.f32 %v701_v59, %v297_v63 }
 0x183   :  { %v302_v3 = vsel %vm301_vm5, %v701_v59, %v298_v0 }
 0x184   :  { %v303_v4 = vmul.f32 %v302_v3, %v288_v1  ;;  %v304_v5 = vmul.f32 %v302_v3, %v289_v2  ;;  %v305_v9 = vmul.f32 %v302_v3, %v290_v7  ;;  %v306_v10 = vmul.f32 %v302_v3, %v291_v8 }
 0x186   :  { %v324_v6 = vpack.c.bf16 %v304_v5, %v303_v4  ;;  %v325_v11 = vpack.c.bf16 %v306_v10, %v305_v9 }
 0x188   :  { %385 = vmatmul.bf16.vlgmr.msra.gmra.mxu1 %v324_v6 }
 0x198   :  { %390 = vmatmul.bf16.gmra.mxu1 %v325_v11 }
 0x205   :  { %v386_v12 = vpop.f32.mrf.mxu1 }
 0x206   :  { %v387_v22 = vadd.f32 %v680_v18, %v386_v12 }
 0x20d   :  { %v388_v15 = vpop.f32.mrf.mxu1 }
 0x20e   :  { %v389_v21 = vadd.f32 %v680_v18, %v388_v15 }
 0x210   :  { %702 = vtanh.f32 %v389_v21 }
 0x211   :  { %704 = vtanh.f32 %v387_v22 }
 0x215   :  { %v391_v23 = vpop.f32.mrf.mxu1 }
 0x216   :  { %v392_v25 = vadd.f32 %v680_v18, %v391_v23  ;;  %v703_v31 = vpop.eup %702 }
 0x217   :  { %v705_v33 = vpop.eup %704  ;;  %v410_v36 = vmul.f32 %v703_v31, %v703_v31 }
 0x218   :  { %706 = vtanh.f32 %v392_v25  ;;  %v409_v38 = vmul.f32 %v705_v33, %v705_v33  ;;  %v400_v39 = vadd.f32 %v705_v33, %v703_v31 }
 0x21a   :  { %v413_v42 = vadd.f32 %v410_v36, %v409_v38 }
 0x21d   :  { %v393_v29 = vpop.f32.mrf.mxu1 }
 0x21e   :  { %v394_v32 = vadd.f32 %v680_v18, %v393_v29  ;;  %v707_v35 = vpop.eup %706 }
 0x21f   :  { %v411_v40 = vmul.f32 %v707_v35, %v707_v35  ;;  %v401_v43 = vadd.f32 %v707_v35, %v400_v39 }
 0x220   :  { %708 = vtanh.f32 %v394_v32 }
 0x221   :  { %v414_v46 = vadd.f32 %v413_v42, %v411_v40 }
 0x226   :  { %v709_v45 = vpop.eup %708 }
 0x227   :  { %v402_v47 = vadd.f32 %v709_v45, %v401_v43  ;;  %v412_v48 = vmul.f32 %v709_v45, %v709_v45 }
 0x229   :  { %v403_v50 = vrot.slane %v402_v47, 4  ;;  %v415_v51 = vadd.f32 %v414_v46, %v412_v48 }
 0x22b   :  { %v404_v52 = vadd.f32 %v403_v50, %v402_v47  ;;  %v416_v53 = vrot.slane %v415_v51, 4 }
 0x22d   :  { %v405_v54 = vrot.slane %v404_v52, 2  ;;  %v417_v55 = vadd.f32 %v416_v53, %v415_v51 }
 0x22f   :  { %v406_v56 = vadd.f32 %v405_v54, %v404_v52  ;;  %v418_v57 = vrot.slane %v417_v55, 2 }
 0x231   :  { %v407_v58 = vrot.slane %v406_v56, 1  ;;  %v419_v59 = vadd.f32 %v418_v57, %v417_v55 }
 0x233   :  { %v408_v60 = vadd.f32 %v407_v58, %v406_v56  ;;  %v420_v61 = vrot.slane %v419_v59, 1 }
 0x235   :  { %v421_v62 = vadd.f32 %v420_v61, %v419_v59  ;;  %v422_v63 = vmul.f32 0.03125, %v408_v60 }
 0x237   :  { %v423_v0 = vmul.f32 0.03125, %v421_v62  ;;  %v424_v1 = vmul.f32 %v422_v63, %v422_v63  ;;  %v426_v10 = vsub.f32 %v705_v33, %v422_v63  ;;  %v427_v13 = vsub.f32 %v703_v31, %v422_v63 }
 0x238   :  { %v428_v15 = vsub.f32 %v707_v35, %v422_v63  ;;  %v429_v17 = vsub.f32 %v709_v45, %v422_v63 }
 0x239   :  { %v425_v2 = vsub.f32 %v423_v0, %v424_v1 }
 0x23b   :  { %v430_v3 = vadd.f32 1e-05, %v425_v2 }
 0x23d   :  { %710 = vrsqrt.f32 %v430_v3  ;;  %vm437_vm7 = vweird.f32 %v430_v3 }
 0x243   :  { %v711_v4 = vpop.eup %710 }
 0x244   :  { %v432_v5 = vmul.f32 %v711_v4, %v430_v3  ;;  %vm438_vm6 = vweird.f32 %v711_v4 }
 0x245   :  { %vm439_vm8 = vmor %vm437_vm7, %vm438_vm6 }
 0x246   :  { %v433_v6 = vmul.f32 %v711_v4, %v432_v5 }
 0x248   :  { %v434_v7 = vmul.f32 0.5, %v433_v6 }
 0x24a   :  { %v435_v8 = vsub.f32 1.5, %v434_v7 }
 0x24c   :  { %v436_v9 = vmul.f32 %v711_v4, %v435_v8 }
 0x24e   :  { %v440_v11 = vsel %vm439_vm8, %v711_v4, %v436_v9 }
 0x24f   :  { %v441_v12 = vmul.f32 %v440_v11, %v426_v10  ;;  %v442_v14 = vmul.f32 %v440_v11, %v427_v13  ;;  %v443_v16 = vmul.f32 %v440_v11, %v428_v15  ;;  %v444_v18 = vmul.f32 %v440_v11, %v429_v17 }
 0x251   :  { %481 = vmatmul.f32.vlgmr.msra.gmra.mxu2 %v441_v12 }
 0x259   :  { %484 = vmatmul.f32.gmra.mxu2 %v442_v14 }
 0x261   :  { %487 = vmatmul.f32.gmra.mxu2 %v443_v16 }
 0x269   :  { %490 = vmatmul.f32.gmra.mxu2 %v444_v18 }
 0x2d4   :  { %v482_v20 = vpop.f32.mrf.mxu2 }
 0x2d5   :  { %v483_v21 = vadd.f32 %v681_v19, %v482_v20 }
 0x2d7   :  { %v498_v22 = vand.u32 2147483647, %v483_v21  ;;  %v494_v48 = vmax.f32 %v483_v21, 0.0 }
 0x2d9   :  { %v502_v23 = vsub.f32 0.0, %v498_v22 }
 0x2db   :  { %v506_v24 = vmul.f32 1.442695, %v502_v23 }
 0x2dc   :  { %v485_v25 = vpop.f32.mrf.mxu2 }
 0x2dd   :  { %712 = vpow2.f32 %v506_v24  ;;  %v486_v26 = vadd.f32 %v681_v19, %v485_v25 }
 0x2df   :  { %v499_v27 = vand.u32 2147483647, %v486_v26  ;;  %v495_v62 = vmax.f32 %v486_v26, 0.0 }
 0x2e1   :  { %v503_v28 = vsub.f32 0.0, %v499_v27 }
 0x2e3   :  { %v713_v29 = vpop.eup %712  ;;  %v508_v30 = vmul.f32 1.442695, %v503_v28 }
 0x2e4   :  { %v514_v31 = vadd.f32 1.0, %v713_v29  ;;  %v517_v32 = vmul.f32 -0.5, %v713_v29  ;;  %v488_v33 = vpop.f32.mrf.mxu2  ;;  %v520_v38 = vand.u32 2147483647, %v713_v29 }
 0x2e5   :  { %714 = vpow2.f32 %v508_v30  ;;  %v489_v34 = vadd.f32 %v681_v19, %v488_v33 }
 0x2e6   :  { %716 = vlog2.f32 %v514_v31  ;;  %v518_v36 = vadd.f32 1.0, %v517_v32  ;;  %vm521_vm9 = vcmp.lt.f32.partialorder %v520_v38, 0.0004427343 }
 0x2e7   :  { %v500_v35 = vand.u32 2147483647, %v489_v34  ;;  %v496_v9 = vmax.f32 %v489_v34, 0.0 }
 0x2e8   :  { %v519_v42 = vmul.f32 %v713_v29, %v518_v36 }
 0x2e9   :  { %v504_v37 = vsub.f32 0.0, %v500_v35 }
 0x2eb   :  { %v715_v39 = vpop.eup %714  ;;  %v510_v40 = vmul.f32 1.442695, %v504_v37 }
 0x2ec   :  { %v717_v41 = vpop.eup %716  ;;  %v523_v43 = vadd.f32 1.0, %v715_v39  ;;  %v491_v44 = vpop.f32.mrf.mxu2  ;;  %v526_v46 = vmul.f32 -0.5, %v715_v39  ;;  %v529_v54 = vand.u32 2147483647, %v715_v39 }
 0x2ed   :  { %v516_v45 = vmul.f32 0.6931472, %v717_v41  ;;  %718 = vpow2.f32 %v510_v40  ;;  %v492_v47 = vadd.f32 %v681_v19, %v491_v44 }
 0x2ee   :  { %720 = vlog2.f32 %v523_v43  ;;  %v527_v52 = vadd.f32 1.0, %v526_v46  ;;  %vm530_vm10 = vcmp.lt.f32.partialorder %v529_v54, 0.0004427343 }
 0x2ef   :  { %v522_v49 = vsel %vm521_vm9, %v519_v42, %v516_v45  ;;  %v501_v50 = vand.u32 2147483647, %v492_v47  ;;  %v497_v17 = vmax.f32 %v492_v47, 0.0 }
 0x2f0   :  { %v550_v51 = vadd.f32 %v522_v49, %v494_v48  ;;  %v528_v60 = vmul.f32 %v715_v39, %v527_v52 }
 0x2f1   :  { %v505_v53 = vsub.f32 0.0, %v501_v50 }
 0x2f2   :  { %554 = vst [vmem:[#allocation8] sm:$0xff] %v550_v51 }
 0x2f3   :  { %v719_v55 = vpop.eup %718  ;;  %v512_v56 = vmul.f32 1.442695, %v505_v53 }
 0x2f4   :  { %v721_v57 = vpop.eup %720  ;;  %v532_v58 = vadd.f32 1.0, %v719_v55  ;;  %v535_v61 = vmul.f32 -0.5, %v719_v55  ;;  %v538_v2 = vand.u32 2147483647, %v719_v55 }
 0x2f5   :  { %v525_v59 = vmul.f32 0.6931472, %v721_v57  ;;  %722 = vpow2.f32 %v512_v56 }
 0x2f6   :  { %724 = vlog2.f32 %v532_v58  ;;  %v536_v1 = vadd.f32 1.0, %v535_v61  ;;  %vm539_vm11 = vcmp.lt.f32.partialorder %v538_v2, 0.0004427343 }
 0x2f7   :  { %v531_v63 = vsel %vm530_vm10, %v528_v60, %v525_v59 }
 0x2f8   :  { %v551_v0 = vadd.f32 %v531_v63, %v495_v62  ;;  %v537_v7 = vmul.f32 %v719_v55, %v536_v1 }
 0x2fa   :  { %555 = vst [vmem:[#allocation8 + $0x8] sm:$0xff] %v551_v0 }
 0x2fb   :  { %v723_v3 = vpop.eup %722 }
 0x2fc   :  { %v725_v4 = vpop.eup %724  ;;  %v541_v5 = vadd.f32 1.0, %v723_v3  ;;  %v544_v8 = vmul.f32 -0.5, %v723_v3  ;;  %v547_v13 = vand.u32 2147483647, %v723_v3 }
 0x2fd   :  { %v534_v6 = vmul.f32 0.6931472, %v725_v4 }
 0x2fe   :  { %726 = vlog2.f32 %v541_v5  ;;  %v545_v12 = vadd.f32 1.0, %v544_v8  ;;  %vm548_vm12 = vcmp.lt.f32.partialorder %v547_v13, 0.0004427343 }
 0x2ff   :  { %v540_v10 = vsel %vm539_vm11, %v537_v7, %v534_v6 }
 0x300   :  { %v552_v11 = vadd.f32 %v540_v10, %v496_v9  ;;  %v546_v16 = vmul.f32 %v723_v3, %v545_v12 }
 0x302   :  { %556 = vst [vmem:[#allocation8 + $0x10] sm:$0xff] %v552_v11 }
 0x304   :  { %v727_v14 = vpop.eup %726 }
 0x305   :  { %v543_v15 = vmul.f32 0.6931472, %v727_v14 }
 0x307   :  { %v549_v18 = vsel %vm548_vm12, %v546_v16, %v543_v15 }
 0x308   :  { %v553_v19 = vadd.f32 %v549_v18, %v497_v17 }
 0x30a   :  { %557 = vst [vmem:[#allocation8 + $0x18] sm:$0xff] %v553_v19 }
 0x30b   :  { %570 = dma.vmem_to_hbm [thread:$0]  %s563_s17, 512, %s565_s20, [#allocation4], %s835_s25, %s835_s25, %s836_s26  }
 0x30c   :  { %828 = dma.done.wait [#allocation4], 512  }
 0x30d   :  { %829 = vsyncadd [#allocation4], 4294966784 }
 0x30e   :  { %575 = vsyncpa [#allocation3], 1 }
 0x30f   :  { %576 = vsyncpa [#allocation6], 1 }
 0x310   :  { %577 = vsyncpa [#allocation4], 1 }

</bundles_post_ra>
